<compile_context>
chip_gen: v7x
topology: tpu7x:2x2x1
jax: 0.10.0
libtpu: 0.0.40
codegen_flags: <defaults>
</compile_context>

<pallas_src>
import functools

import jax
import jax.numpy as jnp
from jax.experimental import pallas as pl
from jax.experimental.pallas import tpu as pltpu


def _entropy_kernel(x_ref, o_ref, *, true_b, tb, needs_mask):
    i = pl.program_id(0)

    x_native = x_ref[...]                                     # (TB, C) input dtype
    # Row max in the native dtype (exact: max is order-preserving), cast after.
    m = jnp.max(x_native, axis=1, keepdims=True).astype(jnp.float32)   # (TB, 1)
    x = x_native.astype(jnp.float32)                          # (TB, C)
    shifted = x - m                                           # (TB, C)
    e = jnp.exp(shifted)                                      # (TB, C)
    denom = jnp.sum(e, axis=1, keepdims=True)                 # (TB, 1)
    num = jnp.sum(e * shifted, axis=1, keepdims=True)         # (TB, 1)

    # Per-row  sum_j p_j * log p_j  =  num/denom - log(denom); only (TB,1) work.
    row = num * pl.reciprocal(denom, approx=True) - jnp.log(denom)     # (TB, 1)

    if needs_mask:
        last = pl.num_programs(0) - 1

        @pl.when(i != last)
        def _():
            o_ref[...] = jnp.full((1, 8, 128), jnp.sum(row), dtype=jnp.float32)

        @pl.when(i == last)
        def _():
            # Mask rows beyond the true batch size (grid cdiv padding). Keep the
            # select form: garbage/NaN in masked rows must be discarded, never
            # multiplied by zero.
            row_ids = i * tb + jax.lax.broadcasted_iota(jnp.int32, (tb, 1), 0)
            masked = jnp.where(row_ids < true_b, row, 0.0)
            o_ref[...] = jnp.full((1, 8, 128), jnp.sum(masked), dtype=jnp.float32)
    else:
        o_ref[...] = jnp.full((1, 8, 128), jnp.sum(row), dtype=jnp.float32)


def entropy_loss(x: jax.Array, *, tb: int | None = None) -> jax.Array:
    """Pallas implementation of EntropyLoss.forward.

    x: (B, C) logits (softmax over C, i.e. dim=1 in the PyTorch module).
    Returns a scalar float32 (negative mean entropy, as in the reference).
    """
    B, C = x.shape
    itemsize = jnp.dtype(x.dtype).itemsize

    # Generation-aware VMEM budget (v7x has only 64 MiB physical VMEM per TC).
    try:
        vmem_cap = int(pltpu.get_tpu_info().vmem_capacity_bytes)
    except Exception:
        vmem_cap = 128 << 20
    if vmem_cap <= (64 << 20):
        vmem_limit = 36 << 20          # v7x
    else:
        vmem_limit = 64 << 20          # v5e / v6e

    if tb is None:
        # Rows per tile from the VMEM budget: double-buffered input tile plus
        # ~4 live (tb, C) f32 temporaries (astype copy, shifted, e, e*shifted),
        # capped so the input tile stays around 8 MiB.
        budget = vmem_limit - (2 << 20)                      # headroom
        per_row = 2 * C * itemsize + 4 * C * 4
        tb_budget = budget // per_row
        tb_input = (8 << 20) // max(1, C * itemsize)
        tb = int(min(tb_budget, tb_input))
        tb = max(8, (tb // 8) * 8)
    if tb >= B:
        tb = B                         # single block equal to full batch dim
    else:
        tb = max(8, (tb // 8) * 8)     # sublane-aligned tile

    grid_n = pl.cdiv(B, tb)
    needs_mask = (B % tb) != 0         # statically known; skip mask when exact

    kernel = functools.partial(_entropy_kernel, true_b=B, tb=tb,
                               needs_mask=needs_mask)

    partials = pl.pallas_call(
        kernel,
        out_shape=jax.ShapeDtypeStruct((grid_n, 8, 128), jnp.float32),
        grid_spec=pltpu.PrefetchScalarGridSpec(
            num_scalar_prefetch=0,
            grid=(grid_n,),
            in_specs=[pl.BlockSpec((tb, C), lambda i: (i, 0))],
            # One independent (8, 128)-aligned partial block per grid step:
            # no shared accumulator, so the axis can be "parallel".
            out_specs=pl.BlockSpec((1, 8, 128), lambda i: (i, 0, 0)),
        ),
        compiler_params=pltpu.CompilerParams(
            dimension_semantics=("parallel",),
            vmem_limit_bytes=int(vmem_limit),
        ),
        cost_estimate=pl.CostEstimate(
            flops=6 * B * C,
            transcendentals=B * C,
            bytes_accessed=B * C * itemsize + grid_n * 8 * 128 * 4,
        ),
    )(x)

    # Tiny final reduce + /B in the wrapper (on v7x this lets the batch tiles
    # split across both TensorCores; on v5e/v6e it is a no-op cost-wise).
    return jnp.sum(partials[:, 0, 0]) / jnp.float32(B)


def entropy_loss_ref(x: jax.Array) -> jax.Array:
    """Pure-JAX reference mirroring the PyTorch semantics."""
    xf = x.astype(jnp.float32)
    sm = jax.nn.softmax(xf, axis=1)
    lsm = jax.nn.log_softmax(xf, axis=1)
    return jnp.sum(sm * lsm) / x.shape[0]


if __name__ == "__main__":
    root = jax.random.PRNGKey(0)
    k1, k2, k3, k4 = jax.random.split(root, 4)

    # Small, module-consistent logits: batch=8, classes=128 (single tile path).
    x1 = jax.random.normal(k1, (8, 128), dtype=jnp.float32)
    out1 = jax.block_until_ready(entropy_loss(x1))
    ref1 = jax.block_until_ready(entropy_loss_ref(x1))
    assert jnp.allclose(out1, ref1, atol=1e-3, rtol=1e-3), (out1, ref1)

    # Multi-tile + padded-last-tile path: B=20, TB=8 -> grid=(3,), 4 masked rows.
    x2 = jax.random.normal(k2, (20, 128), dtype=jnp.float32)
    out2 = jax.block_until_ready(entropy_loss(x2, tb=8))
    ref2 = jax.block_until_ready(entropy_loss_ref(x2))
    assert jnp.allclose(out2, ref2, atol=1e-3, rtol=1e-3), (out2, ref2)

    # Classifier-like small class count (C not lane-aligned, full-dim block).
    x3 = jax.random.normal(k3, (16, 10), dtype=jnp.float32)
    out3 = jax.block_until_ready(entropy_loss(x3))
    ref3 = jax.block_until_ready(entropy_loss_ref(x3))
    assert jnp.allclose(out3, ref3, atol=1e-3, rtol=1e-3), (out3, ref3)

    # bf16 input path (native-dtype row max, f32 exp path).
    x4 = jax.random.normal(k4, (24, 128), dtype=jnp.bfloat16)
    out4 = jax.block_until_ready(entropy_loss(x4))
    ref4 = jax.block_until_ready(entropy_loss_ref(x4))
    assert jnp.allclose(out4, ref4, atol=2e-3, rtol=2e-3), (out4, ref4)

    print("KERNEL_OK")
</pallas_src>

<mosaic_0001>
module attributes {stable_mosaic.version = 11 : i64} {
  func.func @_entropy_kernel(%arg0: i32, %arg1: memref<8x128xf32, #tpu.memory_space<vmem>>, %arg2: memref<1x8x128xf32, #tpu.memory_space<vmem>>) attributes {dimension_semantics = [#tpu.dimension_semantics<parallel>], iteration_bounds = array<i64: 1>, scalar_prefetch = 0 : i64, scratch_operands = 0 : i64, tpu.core_type = #tpu.core_type<tc>, window_params = [{transform_indices = @transform_0, window_bounds = array<i64: 8, 128>}, {transform_indices = @transform_1, window_bounds = array<i64: 1, 8, 128>}]} {
    %c0 = arith.constant 0 : index
    %c0_0 = arith.constant 0 : index
    %0 = vector.load %arg1[%c0, %c0_0] : memref<8x128xf32, #tpu.memory_space<vmem>>, vector<8x128xf32>
    %cst = arith.constant dense<0xFF800000> : vector<8xf32>
    %1 = vector.multi_reduction <maximumf>, %0, %cst [1] : vector<8x128xf32> to vector<8xf32>
    %2 = vector.shape_cast %1 : vector<8xf32> to vector<8x1xf32>
    %3 = vector.broadcast %2 : vector<8x1xf32> to vector<8x128xf32>
    %4 = arith.subf %0, %3 : vector<8x128xf32>
    %5 = math.exp %4 : vector<8x128xf32>
    %cst_1 = arith.constant dense<0.000000e+00> : vector<8xf32>
    %6 = vector.multi_reduction <add>, %5, %cst_1 [1] : vector<8x128xf32> to vector<8xf32>
    %7 = vector.shape_cast %6 : vector<8xf32> to vector<8x1xf32>
    %8 = arith.mulf %5, %4 : vector<8x128xf32>
    %cst_2 = arith.constant dense<0.000000e+00> : vector<8xf32>
    %9 = vector.multi_reduction <add>, %8, %cst_2 [1] : vector<8x128xf32> to vector<8xf32>
    %10 = vector.shape_cast %9 : vector<8xf32> to vector<8x1xf32>
    %11 = tpu.reciprocal %7 {approx = true} : vector<8x1xf32> -> vector<8x1xf32>
    %12 = arith.mulf %10, %11 : vector<8x1xf32>
    %13 = math.log %7 : vector<8x1xf32>
    %14 = arith.subf %12, %13 : vector<8x1xf32>
    %15 = vector.shape_cast %14 : vector<8x1xf32> to vector<1x8x1xf32>
    %cst_3 = arith.constant dense<0.000000e+00> : vector<1xf32>
    %16 = vector.multi_reduction <add>, %15, %cst_3 [1, 2] : vector<1x8x1xf32> to vector<1xf32>
    %17 = vector.shape_cast %16 : vector<1xf32> to vector<1x1x1xf32>
    %18 = vector.extract %17[0, 0, 0] : f32 from vector<1x1x1xf32>
    %19 = vector.broadcast %18 : f32 to vector<1x8x128xf32>
    %c0_4 = arith.constant 0 : index
    %c0_5 = arith.constant 0 : index
    %c0_6 = arith.constant 0 : index
    %20 = vector.load %arg2[%c0_4, %c0_5, %c0_6] : memref<1x8x128xf32, #tpu.memory_space<vmem>>, vector<1x8x128xf32>
    tpu.vector_store %arg2[%c0_4, %c0_5, %c0_6], %19 {strides = array<i32>} : memref<1x8x128xf32, #tpu.memory_space<vmem>>, vector<1x8x128xf32>,
    return
  }
  func.func @transform_0(%arg0: i32) -> (i32, i32) {
    %c0_i32 = arith.constant 0 : i32
    %c0_i32_0 = arith.constant 0 : i32
    return %arg0, %c0_i32 : i32, i32
  }
  func.func @transform_1(%arg0: i32) -> (i32, i32, i32) {
    %c0_i32 = arith.constant 0 : i32
    %c0_i32_0 = arith.constant 0 : i32
    %c0_i32_1 = arith.constant 0 : i32
    return %arg0, %c0_i32, %c0_i32_0 : i32, i32, i32
  }
}

</mosaic_0001>

<bundles_post_ra>
// kernel: tpu_custom_call.1
= control target key start
LH: loop header
LB: loop body
LE: loop exit
PB: predicated region body
PF: predicated region fallthrough
CT: control target
= control target key end

     0   :  { %6 = vsyncpa [#allocation3], 0  ;;  %s159_s0 = inlined_call_operand.hbm [shape: f32[8,128], index: 0, kind: input, shape index: {}]   ;;  %s160_s1 = inlined_call_operand.hbm [shape: f32[1,8,128], index: 1, kind: output, shape index: {}]  }
   0x1   :  { %7 = vsyncpa [#allocation4], 0  ;;  %s123_s6 = smov [#allocation2]   ;;  %s75_s10 = scalar_lea.hbm %s159_s0, 128 }
   0x2   :  { %s14_s7 = sshll.u32 %s123_s6, 4  ;;  %p76_p0 = scmp.ne.s32.totalorder %s159_s0, %s75_s10  ;;  %s15_s7 = int_to_ptr.vmem [resolvable:$true] %s14_s7 }
   0x3   :  { %p79_p1 = scmp.lt.u32.totalorder %s75_s10, %s159_s0 }
   0x5   :  { %p81_p2 = pnand %p79_p1, %p76_p0 }
   0x7   :  { %84 = shalt.err (!%p81_p2)
}
   0x8   :  { %s85_s15 = scalar_lea.vmem %s15_s7, 128  ;;  %p90_p4 = scmp.lt.s32.totalorder %s15_s7, %s15_s7 }
   0x9   :  { %p86_p3 = scmp.ne.s32.totalorder %s15_s7, %s85_s15  ;;  %p91_p5 = scmp.lt.s32.totalorder %s85_s15, %s85_s15 }
   0xb   :  { %p92_p6 = por %p91_p5, %p90_p4 }
   0xd   :  { %p93_p7 = pnand %p92_p6, %p86_p3 }
   0xf   :  { %96 = shalt.err (!%p93_p7)
}
  0x10   :  { %17 = dma.hbm_to_vmem [thread:$0]  %s159_s0, 128, %s15_s7, [#allocation3]  }
  0x11   :  { %119 = dma.done.wait [#allocation3], 128  }
  0x12   :  { %120 = vsyncadd [#allocation3], 4294967168  ;;  %v21_v0 = vld [vmem:[#allocation2] sm:$0xff]  ;;  %vm37_vm0 = vcmask 7168   ;;  %s124_s0 = smov [#allocation5]  }
  0x13   :  { %22 = vmax.xlane.f32.xlu0 %v21_v0  ;;  %s56_s18 = sshll.u32 %s124_s0, 4  ;;  %s57_s18 = int_to_ptr.vmem [resolvable:$true] %s56_s18 }
  0x14   :  { %s97_s20 = scalar_lea.vmem %s57_s18, 128  ;;  %p102_p9 = scmp.lt.s32.totalorder %s57_s18, %s57_s18 }
  0x15   :  { %p98_p8 = scmp.ne.s32.totalorder %s57_s18, %s97_s20  ;;  %p103_p10 = scmp.lt.s32.totalorder %s97_s20, %s97_s20 }
  0x17   :  { %p104_p11 = por %p103_p10, %p102_p9 }
  0x19   :  { %p105_p12 = pnand %p104_p11, %p98_p8 }
  0xa0   :  { %v23_v1 = vpop.xlane.xlu0 %22 }
  0xa1   :  { %v24_v2 = vsub.f32 %v21_v0, %v23_v1 }
  0xa3   :  { %v25_v3 = vmul.f32 1.442695, %v24_v2 }
  0xa5   :  { %69 = vpow2.f32 %v25_v3 }
  0xaf   :  { %v70_v4 = vpop.eup %69 }
  0xb0   :  { %27 = vadd.xlane.f32.xlu0 %v70_v4  ;;  %v29_v5 = vmul.f32 %v70_v4, %v24_v2 }
  0xb2   :  { %30 = vadd.xlane.f32.xlu1 %v29_v5 }
 0x13d   :  { %v28_v6 = vpop.xlane.xlu0 %27 }
 0x13e   :  { %71 = vrcp.f32 %v28_v6 }
 0x13f   :  { %73 = vlog2.f32 %v28_v6  ;;  %v31_v8 = vpop.xlane.xlu1 %30 }
 0x148   :  { %v72_v7 = vpop.eup %71 }
 0x149   :  { %v74_v9 = vpop.eup %73  ;;  %v33_v10 = vmul.f32 %v72_v7, %v31_v8 }
 0x14a   :  { %v35_v11 = vmul.f32 0.6931472, %v74_v9 }
 0x14c   :  { %v36_v12 = vsub.f32 %v33_v10, %v35_v11 }
 0x14e   :  { %v38_v13 = vsel %vm37_vm0, %v36_v12, 0.0 }
 0x14f   :  { %39 = vadd.xlane.f32.xlu1 %v38_v13 }
 0x1dc   :  { %v40_v14 = vpop.xlane.xlu1 %39 }
 0x1dd   :  { %v41_v15 = vrot.slane %v40_v14, 4 }
 0x1df   :  { %v42_v16 = vadd.f32 %v41_v15, %v40_v14 }
 0x1e1   :  { %v43_v17 = vrot.slane %v42_v16, 2 }
 0x1e3   :  { %v44_v18 = vadd.f32 %v43_v17, %v42_v16 }
 0x1e5   :  { %v45_v19 = vrot.slane %v44_v18, 1 }
 0x1e7   :  { %v46_v20 = vadd.f32 %v45_v19, %v44_v18 }
 0x1e9   :  { %65 = vpush %v46_v20 }
 0x21a   :  { %s66_s19 = spop %65 }
 0x21b   :  { %v48_v21 = vstv %s66_s19 }
 0x21c   :  { %49 = vst [vmem:[#allocation5] sm:$0xff] %v48_v21 }
 0x21d   :  { %108 = shalt.err (!%p105_p12)
}
 0x21e   :  { %s109_s23 = scalar_lea.hbm %s160_s1, 128 }
 0x21f   :  { %p110_p13 = scmp.ne.s32.totalorder %s160_s1, %s109_s23  ;;  %p113_p0 = scmp.lt.u32.totalorder %s109_s23, %s160_s1 }
 0x221   :  { %p115_p1 = pnand %p113_p0, %p110_p13 }
 0x223   :  { %118 = shalt.err (!%p115_p1)
}
 0x224   :  { %59 = dma.vmem_to_hbm [thread:$0]  %s57_s18, 128, %s160_s1, [#allocation4]  }
 0x225   :  { %121 = dma.done.wait [#allocation4], 128  }
 0x226   :  { %122 = vsyncadd [#allocation4], 4294967168 }
 0x227   :  { %63 = vsyncpa [#allocation3], 1 }
 0x228   :  { %64 = vsyncpa [#allocation4], 1 }

</bundles_post_ra>
